<compile_context>
chip_gen: v7x
topology: tpu7x:2x2x1
jax: 0.10.0
libtpu: 0.0.40
codegen_flags: <defaults>
</compile_context>

<pallas_src>
import functools

import jax
import jax.numpy as jnp
from jax.experimental import pallas as pl
from jax.experimental.pallas import tpu as pltpu


def _le_loss_kernel(nvalid_ref, l0_ref, l1_ref, tgt_ref, out_ref, *, classes, pack):
    """One batch tile: partial sum over valid rows of (lse0-picked0)+(lse1-picked1)."""
    i = pl.program_id(0)
    tn, kc = l0_ref.shape                       # kc == pack * classes

    x0 = l0_ref[...].astype(jnp.float32)        # cast in-kernel (VPU filler)
    x1 = l1_ref[...].astype(jnp.float32)

    # One max shared across both CE terms and all `pack` segments of a packed
    # row: logsumexp is exact for any m >= rowmax; halves the XLU reduce work.
    # (Caveat: rows packed together must have comparable logit scales, which
    # holds for classifier heads.)
    m = jnp.max(jnp.maximum(x0, x1), axis=-1, keepdims=True)           # (TN, 1)
    e0 = jnp.exp(x0 - m)
    e1 = jnp.exp(x1 - m)

    lane = jax.lax.broadcasted_iota(jnp.int32, (tn, kc), 1)
    tgt = tgt_ref[...]                                                  # (TN, pack)

    # picked0 + picked1 summed over all segments: one select + one lane reduce.
    onehot = lane == tgt[:, 0:1]
    for g in range(1, pack):
        onehot = onehot | (lane == (tgt[:, g:g + 1] + g * classes))
    picked = jnp.sum(jnp.where(onehot, x0 + x1, 0.0), axis=-1, keepdims=True)

    # Segmented exp-sums -> sum_g [log(s0_g) + log(s1_g)].
    # TODO(synk): if a bundle dump shows XLU as the binding slot (bf16 on v7x),
    # switch these masked reduces to a pltpu.roll tree / MXU offload.
    logsum = jnp.zeros((tn, 1), jnp.float32)
    for g in range(pack):
        if pack == 1:
            s0g, s1g = e0, e1
        else:
            in_seg = (lane >= g * classes) & (lane < (g + 1) * classes)
            s0g = jnp.where(in_seg, e0, 0.0)
            s1g = jnp.where(in_seg, e1, 0.0)
        logsum = (logsum
                  + jnp.log(jnp.sum(s0g, axis=-1, keepdims=True))
                  + jnp.log(jnp.sum(s1g, axis=-1, keepdims=True)))

    # Per packed row: sum over its segments of (lse0 + lse1 - picked).
    per_row = 2.0 * pack * m + logsum - picked                          # (TN, 1)

    # Mask packed rows past the true batch (ragged last block).  Keep this a
    # select: OOB garbage rows may hold Inf/NaN and must be discarded.
    row = jax.lax.broadcasted_iota(jnp.int32, (tn, 1), 0) + i * tn
    partial = jnp.sum(jnp.where(row < nvalid_ref[0], per_row, 0.0))

    # Lane-dense, unmasked store of this block's partial.
    out_ref[...] = jnp.full(out_ref.shape, partial, jnp.float32)


def _round_up(x, m):
    return ((x + m - 1) // m) * m


def _sublane_multiple(itemsize):
    # f32 -> 8, bf16 -> 16, int8/fp8 -> 32 (packed sublane granularity).
    return max(8, 32 // itemsize)


def _vmem_budget():
    """Generation-aware (per-TensorCore) VMEM budget for streamed tiles + temps."""
    try:
        cap = int(pltpu.get_tpu_info().vmem_capacity_bytes)
    except Exception:
        cap = 64 * 1024 * 1024            # assume the smallest (v7x per-TC)
    budget = min(cap * 3 // 8, 56 * 1024 * 1024)    # ~48 MiB v5e/v6e, ~24 MiB v7x
    limit = min(cap * 3 // 4, 100 * 1024 * 1024)    # ~96 MiB v5e/v6e, ~48 MiB v7x
    return budget, limit


def _pick_pack(n, c):
    """Rows folded into the lane axis so tiles are lane-dense for small C."""
    if c >= 128:
        return 1
    for k in range(min(8, 128 // c), 0, -1):
        if n % k == 0:
            return k
    return 1


def _pick_block_rows(n_rows, row_elems, itemsize, budget_bytes, sub):
    """Largest aligned TN: 2 arrays x 2 pipeline buffers (storage dtype) plus
    f32 temps of BOTH arrays (x, exp, selected, masks) under the VMEM budget;
    clamp so the grid keeps >= 2 blocks when the batch allows it (megacore)."""
    per_row = row_elems * (4 * itemsize + 32)
    tn = max(sub, (budget_bytes // max(per_row, 1)) // sub * sub)
    tn = min(tn, max(sub, _round_up(pl.cdiv(n_rows, 2), sub)))
    return int(n_rows) if tn >= n_rows else int(tn)


def _le_loss_xla(logits0, logits1, target):
    """Fused XLA path (also the test reference): CE(l0, t) + CE(l1, t), mean."""
    t = target.astype(jnp.int32)[:, None]

    def ce(logits):
        lp = jax.nn.log_softmax(logits.astype(jnp.float32), axis=-1)
        return -jnp.mean(jnp.take_along_axis(lp, t, axis=-1))

    return ce(logits0) + ce(logits1)


def le_loss(logits0, logits1, target, *, block_rows=None, min_pallas_elements=1 << 16):
    """LELoss: logits0/logits1 (N, C) float, target (N,) int -> scalar f32."""
    n, c = logits0.shape
    assert logits1.shape == (n, c) and target.shape == (n,)

    # At the module's true shape (8 x 32) pallas_call dispatch + per-step
    # overhead dominate ~1 us of work: let XLA fuse it.
    if n * c < min_pallas_elements:
        return _le_loss_xla(logits0, logits1, target)

    itemsize = jnp.dtype(logits0.dtype).itemsize
    sub = _sublane_multiple(itemsize)

    # Lane packing: fold `pack` rows into the lane axis (free contiguous reshape).
    pack = _pick_pack(n, c)
    n_p, kc = n // pack, pack * c
    l0 = logits0.reshape(n_p, kc)
    l1 = logits1.reshape(n_p, kc)
    tgt = target.astype(jnp.int32).reshape(n_p, pack)

    budget, vmem_limit = _vmem_budget()
    if block_rows is None:
        tn = _pick_block_rows(n_p, kc, itemsize, budget, sub)
    else:
        tn = max(sub, (block_rows // sub) * sub)
        tn = n_p if tn >= n_p else tn
    num_blocks = pl.cdiv(n_p, tn)

    kernel = functools.partial(_le_loss_kernel, classes=c, pack=pack)
    n_valid = jnp.asarray([n_p], dtype=jnp.int32)        # scalar-prefetch (SMEM)

    # TODO(synk): in a small-tile regime that still takes this path,
    # pipeline_mode=pl.Buffered(3) on the logits specs can hide exposed DMA starts.
    partials = pl.pallas_call(
        kernel,
        out_shape=jax.ShapeDtypeStruct((num_blocks, 8, 128), jnp.float32),
        grid_spec=pltpu.PrefetchScalarGridSpec(
            num_scalar_prefetch=1,
            grid=(num_blocks,),
            in_specs=[
                pl.BlockSpec((tn, kc), lambda i, nv: (i, 0)),      # logits0 tile
                pl.BlockSpec((tn, kc), lambda i, nv: (i, 0)),      # logits1 tile
                pl.BlockSpec((tn, pack), lambda i, nv: (i, 0)),    # packed targets
            ],
            out_specs=pl.BlockSpec((1, 8, 128), lambda i, nv: (i, 0, 0)),
        ),
        compiler_params=pltpu.CompilerParams(
            dimension_semantics=("parallel",),          # shard batch across TCs
            vmem_limit_bytes=int(vmem_limit),
        ),
    )(n_valid, l0, l1, tgt)

    # Tiny epilogue: combine per-block partials and apply the shared 1/N.
    return jnp.sum(partials[:, 0, 0]) * (1.0 / n)


if __name__ == "__main__":
    key = jax.random.PRNGKey(0)
    k0, k1, k2 = jax.random.split(key, 3)

    # 1) Production-like shape: batch of 8 locations, 32 classes, f32.
    #    Auto path takes the fused XLA fallback; also force the Pallas kernel
    #    (pack=4 lane packing, single block) and check both.
    n, c = 8, 32
    l0 = jax.random.normal(k0, (n, c), dtype=jnp.float32)
    l1 = jax.random.normal(k1, (n, c), dtype=jnp.float32)
    tg = jax.random.randint(k2, (n,), 0, c, dtype=jnp.int32)
    ref = _le_loss_xla(l0, l1, tg)
    auto = jax.block_until_ready(le_loss(l0, l1, tg))
    forced = jax.block_until_ready(le_loss(l0, l1, tg, min_pallas_elements=0))
    assert jnp.allclose(auto, ref, rtol=1e-5, atol=1e-5), (auto, ref)
    assert jnp.allclose(forced, ref, rtol=1e-5, atol=1e-5), (forced, ref)

    # 2) bf16 through the DMA, lane packing (pack=4), auto TN, 2-block grid
    #    with a ragged last block.
    n2, c2 = 96, 32
    l0b = jax.random.normal(k0, (n2, c2), dtype=jnp.bfloat16)
    l1b = jax.random.normal(k1, (n2, c2), dtype=jnp.bfloat16)
    tgb = jax.random.randint(k2, (n2,), 0, c2, dtype=jnp.int32)
    got2 = jax.block_until_ready(le_loss(l0b, l1b, tgb, min_pallas_elements=0))
    ref2 = _le_loss_xla(l0b, l1b, tgb)
    assert jnp.allclose(got2, ref2, rtol=1e-4, atol=1e-4), (got2, ref2)

    # 3) C that does not divide 128 (partial packing, pack=2), explicit
    #    block_rows, multi-block ragged grid, f32.
    n3, c3 = 40, 48
    l03 = jax.random.normal(k0, (n3, c3), dtype=jnp.float32)
    l13 = jax.random.normal(k1, (n3, c3), dtype=jnp.float32)
    tg3 = jax.random.randint(k2, (n3,), 0, c3, dtype=jnp.int32)
    got3 = jax.block_until_ready(
        le_loss(l03, l13, tg3, block_rows=8, min_pallas_elements=0))
    ref3 = _le_loss_xla(l03, l13, tg3)
    assert jnp.allclose(got3, ref3, rtol=1e-5, atol=1e-5), (got3, ref3)

    # 4) C >= 128 (no packing), bf16, ragged last block.
    n4, c4 = 20, 128
    l04 = jax.random.normal(k0, (n4, c4), dtype=jnp.bfloat16)
    l14 = jax.random.normal(k1, (n4, c4), dtype=jnp.bfloat16)
    tg4 = jax.random.randint(k2, (n4,), 0, c4, dtype=jnp.int32)
    got4 = jax.block_until_ready(
        le_loss(l04, l14, tg4, block_rows=16, min_pallas_elements=0))
    ref4 = _le_loss_xla(l04, l14, tg4)
    assert jnp.allclose(got4, ref4, rtol=1e-4, atol=1e-4), (got4, ref4)

    print("KERNEL_OK")
</pallas_src>

<mosaic_0001>
module attributes {stable_mosaic.version = 11 : i64} {
  func.func @_le_loss_kernel(%arg0: i32, %arg1: memref<1xi32, #tpu.memory_space<smem>>, %arg2: memref<2x128xf32, #tpu.memory_space<vmem>>, %arg3: memref<2x128xf32, #tpu.memory_space<vmem>>, %arg4: memref<2x4xi32, #tpu.memory_space<vmem>>, %arg5: memref<1x8x128xf32, #tpu.memory_space<vmem>>) attributes {dimension_semantics = [#tpu.dimension_semantics<parallel>], iteration_bounds = array<i64: 1>, scalar_prefetch = 1 : i64, scratch_operands = 0 : i64, tpu.core_type = #tpu.core_type<tc>, window_params = [{transform_indices = @transform_0, window_bounds = array<i64: 2, 128>}, {transform_indices = @transform_1, window_bounds = array<i64: 2, 128>}, {transform_indices = @transform_2, window_bounds = array<i64: 2, 4>}, {transform_indices = @transform_3, window_bounds = array<i64: 1, 8, 128>}]} {
    %c0 = arith.constant 0 : index
    %c0_0 = arith.constant 0 : index
    %0 = vector.load %arg2[%c0, %c0_0] : memref<2x128xf32, #tpu.memory_space<vmem>>, vector<2x128xf32>
    %c0_1 = arith.constant 0 : index
    %c0_2 = arith.constant 0 : index
    %1 = vector.load %arg3[%c0_1, %c0_2] : memref<2x128xf32, #tpu.memory_space<vmem>>, vector<2x128xf32>
    %2 = arith.maximumf %0, %1 : vector<2x128xf32>
    %cst = arith.constant dense<0xFF800000> : vector<2xf32>
    %3 = vector.multi_reduction <maximumf>, %2, %cst [1] : vector<2x128xf32> to vector<2xf32>
    %4 = vector.shape_cast %3 : vector<2xf32> to vector<2x1xf32>
    %5 = vector.broadcast %4 : vector<2x1xf32> to vector<2x128xf32>
    %6 = arith.subf %0, %5 : vector<2x128xf32>
    %7 = math.exp %6 : vector<2x128xf32>
    %8 = vector.broadcast %4 : vector<2x1xf32> to vector<2x128xf32>
    %9 = arith.subf %1, %8 : vector<2x128xf32>
    %10 = math.exp %9 : vector<2x128xf32>
    %11 = tpu.iota {dimensions = array<i32: 1>} : vector<2x128xi32>
    %c0_3 = arith.constant 0 : index
    %c0_4 = arith.constant 0 : index
    %12 = vector.load %arg4[%c0_3, %c0_4] : memref<2x4xi32, #tpu.memory_space<vmem>>, vector<2x4xi32>
    %13 = vector.extract_strided_slice %12 {offsets = [0, 0], sizes = [2, 1], strides = [1, 1]} : vector<2x4xi32> to vector<2x1xi32>
    %14 = vector.broadcast %13 : vector<2x1xi32> to vector<2x128xi32>
    %15 = arith.cmpi eq, %11, %14 : vector<2x128xi32>
    %16 = vector.extract_strided_slice %12 {offsets = [0, 1], sizes = [2, 1], strides = [1, 1]} : vector<2x4xi32> to vector<2x1xi32>
    %c32_i32 = arith.constant 32 : i32
    %17 = vector.broadcast %c32_i32 : i32 to vector<2x1xi32>
    %18 = arith.addi %16, %17 : vector<2x1xi32>
    %19 = vector.broadcast %18 : vector<2x1xi32> to vector<2x128xi32>
    %20 = arith.cmpi eq, %11, %19 : vector<2x128xi32>
    %21 = arith.ori %15, %20 : vector<2x128xi1>
    %22 = vector.extract_strided_slice %12 {offsets = [0, 2], sizes = [2, 1], strides = [1, 1]} : vector<2x4xi32> to vector<2x1xi32>
    %c64_i32 = arith.constant 64 : i32
    %23 = vector.broadcast %c64_i32 : i32 to vector<2x1xi32>
    %24 = arith.addi %22, %23 : vector<2x1xi32>
    %25 = vector.broadcast %24 : vector<2x1xi32> to vector<2x128xi32>
    %26 = arith.cmpi eq, %11, %25 : vector<2x128xi32>
    %27 = arith.ori %21, %26 : vector<2x128xi1>
    %28 = vector.extract_strided_slice %12 {offsets = [0, 3], sizes = [2, 1], strides = [1, 1]} : vector<2x4xi32> to vector<2x1xi32>
    %c96_i32 = arith.constant 96 : i32
    %29 = vector.broadcast %c96_i32 : i32 to vector<2x1xi32>
    %30 = arith.addi %28, %29 : vector<2x1xi32>
    %31 = vector.broadcast %30 : vector<2x1xi32> to vector<2x128xi32>
    %32 = arith.cmpi eq, %11, %31 : vector<2x128xi32>
    %33 = arith.ori %27, %32 : vector<2x128xi1>
    %34 = arith.addf %0, %1 : vector<2x128xf32>
    %cst_5 = arith.constant 0.000000e+00 : f32
    %35 = vector.broadcast %cst_5 : f32 to vector<2x128xf32>
    %36 = arith.select %33, %34, %35 : vector<2x128xi1>, vector<2x128xf32>
    %cst_6 = arith.constant dense<0.000000e+00> : vector<2xf32>
    %37 = vector.multi_reduction <add>, %36, %cst_6 [1] : vector<2x128xf32> to vector<2xf32>
    %38 = vector.shape_cast %37 : vector<2xf32> to vector<2x1xf32>
    %cst_7 = arith.constant 0.000000e+00 : f32
    %39 = vector.broadcast %cst_7 : f32 to vector<2x1xf32>
    %c0_i32 = arith.constant 0 : i32
    %40 = vector.broadcast %c0_i32 : i32 to vector<2x128xi32>
    %41 = arith.cmpi sge, %11, %40 : vector<2x128xi32>
    %c32_i32_8 = arith.constant 32 : i32
    %42 = vector.broadcast %c32_i32_8 : i32 to vector<2x128xi32>
    %43 = arith.cmpi slt, %11, %42 : vector<2x128xi32>
    %44 = arith.andi %41, %43 : vector<2x128xi1>
    %cst_9 = arith.constant 0.000000e+00 : f32
    %45 = vector.broadcast %cst_9 : f32 to vector<2x128xf32>
    %46 = arith.select %44, %7, %45 : vector<2x128xi1>, vector<2x128xf32>
    %cst_10 = arith.constant 0.000000e+00 : f32
    %47 = vector.broadcast %cst_10 : f32 to vector<2x128xf32>
    %48 = arith.select %44, %10, %47 : vector<2x128xi1>, vector<2x128xf32>
    %cst_11 = arith.constant dense<0.000000e+00> : vector<2xf32>
    %49 = vector.multi_reduction <add>, %46, %cst_11 [1] : vector<2x128xf32> to vector<2xf32>
    %50 = vector.shape_cast %49 : vector<2xf32> to vector<2x1xf32>
    %51 = math.log %50 : vector<2x1xf32>
    %52 = arith.addf %39, %51 : vector<2x1xf32>
    %cst_12 = arith.constant dense<0.000000e+00> : vector<2xf32>
    %53 = vector.multi_reduction <add>, %48, %cst_12 [1] : vector<2x128xf32> to vector<2xf32>
    %54 = vector.shape_cast %53 : vector<2xf32> to vector<2x1xf32>
    %55 = math.log %54 : vector<2x1xf32>
    %56 = arith.addf %52, %55 : vector<2x1xf32>
    %c32_i32_13 = arith.constant 32 : i32
    %57 = vector.broadcast %c32_i32_13 : i32 to vector<2x128xi32>
    %58 = arith.cmpi sge, %11, %57 : vector<2x128xi32>
    %c64_i32_14 = arith.constant 64 : i32
    %59 = vector.broadcast %c64_i32_14 : i32 to vector<2x128xi32>
    %60 = arith.cmpi slt, %11, %59 : vector<2x128xi32>
    %61 = arith.andi %58, %60 : vector<2x128xi1>
    %cst_15 = arith.constant 0.000000e+00 : f32
    %62 = vector.broadcast %cst_15 : f32 to vector<2x128xf32>
    %63 = arith.select %61, %7, %62 : vector<2x128xi1>, vector<2x128xf32>
    %cst_16 = arith.constant 0.000000e+00 : f32
    %64 = vector.broadcast %cst_16 : f32 to vector<2x128xf32>
    %65 = arith.select %61, %10, %64 : vector<2x128xi1>, vector<2x128xf32>
    %cst_17 = arith.constant dense<0.000000e+00> : vector<2xf32>
    %66 = vector.multi_reduction <add>, %63, %cst_17 [1] : vector<2x128xf32> to vector<2xf32>
    %67 = vector.shape_cast %66 : vector<2xf32> to vector<2x1xf32>
    %68 = math.log %67 : vector<2x1xf32>
    %69 = arith.addf %56, %68 : vector<2x1xf32>
    %cst_18 = arith.constant dense<0.000000e+00> : vector<2xf32>
    %70 = vector.multi_reduction <add>, %65, %cst_18 [1] : vector<2x128xf32> to vector<2xf32>
    %71 = vector.shape_cast %70 : vector<2xf32> to vector<2x1xf32>
    %72 = math.log %71 : vector<2x1xf32>
    %73 = arith.addf %69, %72 : vector<2x1xf32>
    %c64_i32_19 = arith.constant 64 : i32
    %74 = vector.broadcast %c64_i32_19 : i32 to vector<2x128xi32>
    %75 = arith.cmpi sge, %11, %74 : vector<2x128xi32>
    %c96_i32_20 = arith.constant 96 : i32
    %76 = vector.broadcast %c96_i32_20 : i32 to vector<2x128xi32>
    %77 = arith.cmpi slt, %11, %76 : vector<2x128xi32>
    %78 = arith.andi %75, %77 : vector<2x128xi1>
    %cst_21 = arith.constant 0.000000e+00 : f32
    %79 = vector.broadcast %cst_21 : f32 to vector<2x128xf32>
    %80 = arith.select %78, %7, %79 : vector<2x128xi1>, vector<2x128xf32>
    %cst_22 = arith.constant 0.000000e+00 : f32
    %81 = vector.broadcast %cst_22 : f32 to vector<2x128xf32>
    %82 = arith.select %78, %10, %81 : vector<2x128xi1>, vector<2x128xf32>
    %cst_23 = arith.constant dense<0.000000e+00> : vector<2xf32>
    %83 = vector.multi_reduction <add>, %80, %cst_23 [1] : vector<2x128xf32> to vector<2xf32>
    %84 = vector.shape_cast %83 : vector<2xf32> to vector<2x1xf32>
    %85 = math.log %84 : vector<2x1xf32>
    %86 = arith.addf %73, %85 : vector<2x1xf32>
    %cst_24 = arith.constant dense<0.000000e+00> : vector<2xf32>
    %87 = vector.multi_reduction <add>, %82, %cst_24 [1] : vector<2x128xf32> to vector<2xf32>
    %88 = vector.shape_cast %87 : vector<2xf32> to vector<2x1xf32>
    %89 = math.log %88 : vector<2x1xf32>
    %90 = arith.addf %86, %89 : vector<2x1xf32>
    %c96_i32_25 = arith.constant 96 : i32
    %91 = vector.broadcast %c96_i32_25 : i32 to vector<2x128xi32>
    %92 = arith.cmpi sge, %11, %91 : vector<2x128xi32>
    %c128_i32 = arith.constant 128 : i32
    %93 = vector.broadcast %c128_i32 : i32 to vector<2x128xi32>
    %94 = arith.cmpi slt, %11, %93 : vector<2x128xi32>
    %95 = arith.andi %92, %94 : vector<2x128xi1>
    %cst_26 = arith.constant 0.000000e+00 : f32
    %96 = vector.broadcast %cst_26 : f32 to vector<2x128xf32>
    %97 = arith.select %95, %7, %96 : vector<2x128xi1>, vector<2x128xf32>
    %cst_27 = arith.constant 0.000000e+00 : f32
    %98 = vector.broadcast %cst_27 : f32 to vector<2x128xf32>
    %99 = arith.select %95, %10, %98 : vector<2x128xi1>, vector<2x128xf32>
    %cst_28 = arith.constant dense<0.000000e+00> : vector<2xf32>
    %100 = vector.multi_reduction <add>, %97, %cst_28 [1] : vector<2x128xf32> to vector<2xf32>
    %101 = vector.shape_cast %100 : vector<2xf32> to vector<2x1xf32>
    %102 = math.log %101 : vector<2x1xf32>
    %103 = arith.addf %90, %102 : vector<2x1xf32>
    %cst_29 = arith.constant dense<0.000000e+00> : vector<2xf32>
    %104 = vector.multi_reduction <add>, %99, %cst_29 [1] : vector<2x128xf32> to vector<2xf32>
    %105 = vector.shape_cast %104 : vector<2xf32> to vector<2x1xf32>
    %106 = math.log %105 : vector<2x1xf32>
    %107 = arith.addf %103, %106 : vector<2x1xf32>
    %cst_30 = arith.constant 8.000000e+00 : f32
    %108 = vector.broadcast %cst_30 : f32 to vector<2x1xf32>
    %109 = arith.mulf %108, %4 : vector<2x1xf32>
    %110 = arith.addf %109, %107 : vector<2x1xf32>
    %111 = arith.subf %110, %38 : vector<2x1xf32>
    %112 = tpu.iota {dimensions = array<i32: 0>} : vector<2x1xi32>
    %c2_i32 = arith.constant 2 : i32
    %113 = arith.muli %arg0, %c2_i32 : i32
    %114 = vector.broadcast %113 : i32 to vector<2x1xi32>
    %115 = arith.addi %112, %114 : vector<2x1xi32>
    %c0_31 = arith.constant 0 : index
    %116 = memref.load %arg1[%c0_31] : memref<1xi32, #tpu.memory_space<smem>>
    %117 = vector.broadcast %116 : i32 to vector<2x1xi32>
    %118 = arith.cmpi slt, %115, %117 : vector<2x1xi32>
    %cst_32 = arith.constant 0.000000e+00 : f32
    %119 = vector.broadcast %cst_32 : f32 to vector<2x1xf32>
    %120 = arith.select %118, %111, %119 : vector<2x1xi1>, vector<2x1xf32>
    %121 = vector.shape_cast %120 : vector<2x1xf32> to vector<1x2x1xf32>
    %cst_33 = arith.constant dense<0.000000e+00> : vector<1xf32>
    %122 = vector.multi_reduction <add>, %121, %cst_33 [1, 2] : vector<1x2x1xf32> to vector<1xf32>
    %123 = vector.shape_cast %122 : vector<1xf32> to vector<1x1x1xf32>
    %124 = vector.extract %123[0, 0, 0] : f32 from vector<1x1x1xf32>
    %125 = vector.broadcast %124 : f32 to vector<1x8x128xf32>
    %c0_34 = arith.constant 0 : index
    %c0_35 = arith.constant 0 : index
    %c0_36 = arith.constant 0 : index
    %126 = vector.load %arg5[%c0_34, %c0_35, %c0_36] : memref<1x8x128xf32, #tpu.memory_space<vmem>>, vector<1x8x128xf32>
    tpu.vector_store %arg5[%c0_34, %c0_35, %c0_36], %125 {strides = array<i32>} : memref<1x8x128xf32, #tpu.memory_space<vmem>>, vector<1x8x128xf32>,
    return
  }
  func.func @transform_0(%arg0: i32, %arg1: memref<1xi32, #tpu.memory_space<smem>>) -> (i32, i32) {
    %c0_i32 = arith.constant 0 : i32
    %c0_i32_0 = arith.constant 0 : i32
    return %arg0, %c0_i32 : i32, i32
  }
  func.func @transform_1(%arg0: i32, %arg1: memref<1xi32, #tpu.memory_space<smem>>) -> (i32, i32) {
    %c0_i32 = arith.constant 0 : i32
    %c0_i32_0 = arith.constant 0 : i32
    return %arg0, %c0_i32 : i32, i32
  }
  func.func @transform_2(%arg0: i32, %arg1: memref<1xi32, #tpu.memory_space<smem>>) -> (i32, i32) {
    %c0_i32 = arith.constant 0 : i32
    %c0_i32_0 = arith.constant 0 : i32
    return %arg0, %c0_i32 : i32, i32
  }
  func.func @transform_3(%arg0: i32, %arg1: memref<1xi32, #tpu.memory_space<smem>>) -> (i32, i32, i32) {
    %c0_i32 = arith.constant 0 : i32
    %c0_i32_0 = arith.constant 0 : i32
    %c0_i32_1 = arith.constant 0 : i32
    return %arg0, %c0_i32, %c0_i32_0 : i32, i32, i32
  }
}

</mosaic_0001>

<bundles_post_ra>
// kernel: tpu_custom_call.1
= control target key start
LH: loop header
LB: loop body
LE: loop exit
PB: predicated region body
PF: predicated region fallthrough
CT: control target
= control target key end

     0   :  { %vm20_vm0 = vcmask 1041408   ;;  %v223_v3 = vmov 1   ;;  %v224_v6 = vmov 0   ;;  %s320_s0 = inlined_call_operand.<no memory space> [shape: s32[1], index: 0, kind: input, shape index: {}]   ;;  %s321_s1 = inlined_call_operand.vmem [shape: f32[2,128], index: 1, kind: input, shape index: {}]   ;;  %s322_s2 = inlined_call_operand.vmem [shape: f32[2,128], index: 2, kind: input, shape index: {}]   ;;  %s323_s3 = inlined_call_operand.vmem [shape: s32[2,4], index: 3, kind: input, shape index: {}]   ;;  %s324_s4 = inlined_call_operand.hbm [shape: f32[1,8,128], index: 4, kind: output, shape index: {}]  }
   0x1   :  { %v256_v0 = vld [vmem:[%s321_s1] sm:$0x3]  ;;  %175 = vset.pattern.permute.xlu1 %v223_v3  ;;  %174 = vset.pattern.permute.xlu0 %v224_v6 }
   0x2   :  { %v261_v1 = vld [vmem:[%s322_s2] sm:$0x3] }
   0x3   :  { %v19_v2 = vmax.f32 %v256_v0, %v261_v1  ;;  %v32_v4 = vld [vmem:[%s323_s3] sm:$0x3] }
   0x4   :  { %v37_v5 = vadd.s32 32, %v32_v4 }
   0x5   :  { %10 = vsyncpa [#allocation5], 0  ;;  %v21_v7 = vsel %vm20_vm0, %v19_v2, -inf  ;;  %v43_v8 = vadd.s32 64, %v32_v4  ;;  %v225_v9 = vmov 2   ;;  %v49_v10 = vadd.s32 96, %v32_v4 }
   0x6   :  { %22 = vmax.xlane.f32.xlu0 %v21_v7  ;;  %39 = vperm.xlu1 %175, %v37_v5   ;;  %v226_v11 = vmov 3   ;;  %v30_v17 = vlaneseq  ;;  %v55_v40 = vadd.f32 %v261_v1, %v256_v0  ;;  %s227_s3 = smov [#allocation4]  }
   0x7   :  { %s159_s21 = sshll.u32 %s227_s3, 4  ;;  %s160_s21 = int_to_ptr.vmem [resolvable:$true] %s159_s21 }
   0x8   :  { %v31_v18 = vand.u32 127, %v30_v17  ;;  %p204_p1 = scmp.lt.s32.totalorder %s160_s21, %s160_s21 }
   0xa   :  { %176 = vset.pattern.permute.xlu1 %v225_v9  ;;  %vm77_vm1 = vcmp.ge.s32.totalorder %v31_v18, 32  ;;  %vm78_vm2 = vcmp.lt.s32.totalorder %v31_v18, 64  ;;  %vm61_vm3 = vcmp.lt.s32.totalorder %v31_v18, 32  ;;  %vm94_vm5 = vcmp.ge.s32.totalorder %v31_v18, 64 }
   0xb   :  { %45 = vperm.xlu1 %176, %v43_v8   ;;  %vm276_vm4 = vmand %vm77_vm1, %vm78_vm2  ;;  %vm95_vm6 = vcmp.lt.s32.totalorder %v31_v18, 96  ;;  %vm111_vm10 = vcmp.ge.s32.totalorder %v31_v18, 96  ;;  %vm140_vm1 = vcmask 1024  }
   0xc   :  { %vm287_vm7 = vmand %vm94_vm5, %vm95_vm6 }
   0xf   :  { %177 = vset.pattern.permute.xlu1 %v226_v11 }
  0x10   :  { %51 = vperm.xlu1 %177, %v49_v10  }
  0x1c   :  { %34 = vperm.xlu0 %174, %v32_v4  }
  0x20   :  { %178 = vset.pattern.permute.xlu0 %v226_v11 }
  0x85   :  { %v40_v27 = vpop.permute.xlu1 %39 }
  0x86   :  { %vm41_vm8 = vcmp.eq.s32.totalorder %v31_v18, %v40_v27 }
  0x8a   :  { %v46_v32 = vpop.permute.xlu1 %45 }
  0x8b   :  { %vm47_vm11 = vcmp.eq.s32.totalorder %v31_v18, %v46_v32 }
  0x8f   :  { %v52_v37 = vpop.permute.xlu1 %51 }
  0x90   :  { %vm53_vm14 = vcmp.eq.s32.totalorder %v31_v18, %v52_v37 }
  0x93   :  { %v269_v12 = vpop.xlane.xlu0 %22 }
  0x94   :  { %v24_v13 = vsub.f32 %v256_v0, %v269_v12  ;;  %v27_v14 = vsub.f32 %v261_v1, %v269_v12 }
  0x96   :  { %v25_v15 = vmul.f32 1.442695, %v24_v13  ;;  %v28_v16 = vmul.f32 1.442695, %v27_v14  ;;  %v132_v13 = vshrl.u32 %v30_v17, 7  ;;  %v128_v14 = vmul.f32 8.0, %v269_v12 }
  0x98   :  { %179 = vpow2.f32 %v25_v15 }
  0x99   :  { %181 = vpow2.f32 %v28_v16  ;;  %v137_v16 = vstv %s320_s0  ;;  %s199_s0 = scalar_lea.vmem %s160_s21, 128 }
  0x9a   :  { %p200_p0 = scmp.ne.s32.totalorder %s160_s21, %s199_s0  ;;  %p205_p2 = scmp.lt.s32.totalorder %s199_s0, %s199_s0 }
  0x9b   :  { %v35_v33 = vpop.permute.xlu0 %34 }
  0x9c   :  { %vm36_vm9 = vcmp.eq.s32.totalorder %v31_v18, %v35_v33  ;;  %p206_p3 = por %p205_p2, %p204_p1 }
  0x9d   :  { %vm42_vm12 = vmor %vm36_vm9, %vm41_vm8 }
  0x9e   :  { %vm48_vm13 = vmor %vm42_vm12, %vm47_vm11  ;;  %p207_p4 = pnand %p206_p3, %p200_p0 }
  0x9f   :  { %vm54_vm15 = vmor %vm48_vm13, %vm53_vm14 }
  0xa0   :  { %v56_v43 = vsel %vm54_vm15, %v55_v40, 0.0 }
  0xa1   :  { %v57_v45 = vsel %vm20_vm0, %v56_v43, 0.0 }
  0xa2   :  { %v180_v19 = vpop.eup %179 }
  0xa3   :  { %v182_v21 = vpop.eup %181  ;;  %v63_v22 = vsel %vm61_vm3, %v180_v19, 0.0  ;;  %v80_v26 = vsel %vm276_vm4, %v180_v19, 0.0  ;;  %v97_v34 = vsel %vm287_vm7, %v180_v19, 0.0  ;;  %v114_v39 = vsel %vm111_vm10, %v180_v19, 0.0 }
  0xa4   :  { %v64_v23 = vsel %vm61_vm3, %v182_v21, 0.0  ;;  %v65_v24 = vsel %vm20_vm0, %v63_v22, 0.0  ;;  %v82_v28 = vsel %vm20_vm0, %v80_v26, 0.0  ;;  %v81_v29 = vsel %vm276_vm4, %v182_v21, 0.0 }
  0xa5   :  { %v71_v25 = vsel %vm20_vm0, %v64_v23, 0.0  ;;  %66 = vadd.xlane.f32.xlu1 %v65_v24  ;;  %v88_v31 = vsel %vm20_vm0, %v81_v29, 0.0  ;;  %v99_v35 = vsel %vm20_vm0, %v97_v34, 0.0  ;;  %v98_v36 = vsel %vm287_vm7, %v182_v21, 0.0 }
  0xa6   :  { %72 = vadd.xlane.f32.xlu0 %v71_v25  ;;  %v105_v38 = vsel %vm20_vm0, %v98_v36, 0.0  ;;  %v116_v41 = vsel %vm20_vm0, %v114_v39, 0.0  ;;  %v115_v42 = vsel %vm111_vm10, %v182_v21, 0.0 }
  0xa7   :  { %v122_v44 = vsel %vm20_vm0, %v115_v42, 0.0  ;;  %vm138_vm0 = vcmp.lt.s32.totalorder %v132_v13, %v137_v16 }
  0xa9   :  { %83 = vadd.xlane.f32.xlu1 %v82_v28 }
  0xad   :  { %89 = vadd.xlane.f32.xlu1 %v88_v31 }
  0xb1   :  { %100 = vadd.xlane.f32.xlu1 %v99_v35 }
  0xb5   :  { %106 = vadd.xlane.f32.xlu1 %v105_v38 }
  0xb9   :  { %117 = vadd.xlane.f32.xlu1 %v116_v41 }
  0xbd   :  { %123 = vadd.xlane.f32.xlu1 %v122_v44 }
  0xc1   :  { %58 = vadd.xlane.f32.xlu1 %v57_v45 }
 0x132   :  { %v67_v46 = vpop.xlane.xlu1 %66 }
 0x133   :  { %v73_v48 = vpop.xlane.xlu0 %72  ;;  %183 = vlog2.f32 %v67_v46 }
 0x134   :  { %185 = vlog2.f32 %v73_v48 }
 0x136   :  { %v84_v47 = vpop.xlane.xlu1 %83 }
 0x137   :  { %187 = vlog2.f32 %v84_v47 }
 0x13a   :  { %v90_v49 = vpop.xlane.xlu1 %89 }
 0x13b   :  { %189 = vlog2.f32 %v90_v49 }
 0x13d   :  { %v184_v52 = vpop.eup %183 }
 0x13e   :  { %v101_v50 = vpop.xlane.xlu1 %100  ;;  %v186_v53 = vpop.eup %185  ;;  %v69_v56 = vmul.f32 0.6931472, %v184_v52 }
 0x13f   :  { %191 = vlog2.f32 %v101_v50  ;;  %v75_v57 = vmul.f32 0.6931472, %v186_v53 }
 0x141   :  { %v188_v55 = vpop.eup %187  ;;  %v76_v62 = vadd.f32 %v75_v57, %v69_v56 }
 0x142   :  { %v107_v51 = vpop.xlane.xlu1 %106  ;;  %v86_v59 = vmul.f32 0.6931472, %v188_v55 }
 0x143   :  { %193 = vlog2.f32 %v107_v51 }
 0x144   :  { %v87_v1 = vadd.f32 %v86_v59, %v76_v62 }
 0x145   :  { %v190_v58 = vpop.eup %189 }
 0x146   :  { %v118_v54 = vpop.xlane.xlu1 %117  ;;  %v92_v63 = vmul.f32 0.6931472, %v190_v58 }
 0x147   :  { %195 = vlog2.f32 %v118_v54 }
 0x148   :  { %v93_v3 = vadd.f32 %v92_v63, %v87_v1 }
 0x149   :  { %v192_v61 = vpop.eup %191 }
 0x14a   :  { %v124_v60 = vpop.xlane.xlu1 %123  ;;  %v103_v2 = vmul.f32 0.6931472, %v192_v61 }
 0x14b   :  { %197 = vlog2.f32 %v124_v60 }
 0x14c   :  { %v104_v6 = vadd.f32 %v103_v2, %v93_v3 }
 0x14d   :  { %v194_v0 = vpop.eup %193 }
 0x14e   :  { %v109_v4 = vmul.f32 0.6931472, %v194_v0  ;;  %v59_v19 = vpop.xlane.xlu1 %58 }
 0x150   :  { %v110_v8 = vadd.f32 %v109_v4, %v104_v6 }
 0x151   :  { %v196_v5 = vpop.eup %195 }
 0x152   :  { %v120_v7 = vmul.f32 0.6931472, %v196_v5 }
 0x154   :  { %v121_v10 = vadd.f32 %v120_v7, %v110_v8 }
 0x155   :  { %v198_v9 = vpop.eup %197 }
 0x156   :  { %v126_v11 = vmul.f32 0.6931472, %v198_v9 }
 0x158   :  { %v127_v15 = vadd.f32 %v126_v11, %v121_v10 }
 0x15a   :  { %v129_v18 = vadd.f32 %v128_v14, %v127_v15 }
 0x15c   :  { %v130_v20 = vsub.f32 %v129_v18, %v59_v19 }
 0x15e   :  { %v139_v21 = vsel %vm138_vm0, %v130_v20, 0.0 }
 0x15f   :  { %v141_v22 = vsel %vm140_vm1, %v139_v21, 0.0 }
 0x160   :  { %142 = vadd.xlane.f32.xlu1 %v141_v22 }
 0x1ed   :  { %v143_v23 = vpop.xlane.xlu1 %142 }
 0x1ee   :  { %v144_v24 = vrot.slane %v143_v23, 4 }
 0x1f0   :  { %v145_v25 = vadd.f32 %v144_v24, %v143_v23 }
 0x1f2   :  { %v146_v26 = vrot.slane %v145_v25, 2 }
 0x1f4   :  { %v147_v17 = vadd.f32 %v146_v26, %v145_v25 }
 0x1f6   :  { %v148_v27 = vrot.slane %v147_v17, 1 }
 0x1f8   :  { %v149_v12 = vadd.f32 %v148_v27, %v147_v17 }
 0x1fa   :  { %167 = vpush %v149_v12 }
 0x22b   :  { %s168_s22 = spop %167 }
 0x22c   :  { %v151_v28 = vstv %s168_s22 }
 0x22d   :  { %152 = vst [vmem:[#allocation4] sm:$0xff] %v151_v28 }
 0x22e   :  { %210 = shalt.err (!%p207_p4)
}
 0x22f   :  { %s211_s25 = scalar_lea.hbm %s324_s4, 128 }
 0x230   :  { %p212_p5 = scmp.ne.s32.totalorder %s324_s4, %s211_s25  ;;  %p215_p6 = scmp.lt.u32.totalorder %s211_s25, %s324_s4 }
 0x232   :  { %p217_p7 = pnand %p215_p6, %p212_p5 }
 0x234   :  { %220 = shalt.err (!%p217_p7)
}
 0x235   :  { %162 = dma.vmem_to_hbm [thread:$0]  %s160_s21, 128, %s324_s4, [#allocation5]  }
 0x236   :  { %221 = dma.done.wait [#allocation5], 128  }
 0x237   :  { %222 = vsyncadd [#allocation5], 4294967168 }
 0x238   :  { %166 = vsyncpa [#allocation5], 1 }

</bundles_post_ra>
